<compile_context>
chip_gen: v5e
topology: v5e:2x2
jax: 0.10.0
libtpu: 0.0.40
codegen_flags: <defaults>
</compile_context>

<pallas_src>
import functools
import math

import jax
import jax.numpy as jnp
from jax.experimental import pallas as pl
from jax.experimental.pallas import tpu as pltpu


def _round_up(x, m):
    return (x + m - 1) // m * m


def _cdiv(a, b):
    return (a + b - 1) // b


def _masked_conv_matmul_kernel(p_ref, w_ref, b_ref, o_ref, acc_ref):
    """One (group, M-tile, K-tile) step of the folded-K conv matmul.

    p_ref:   (tm, tk)       im2col patch tile (LHS, compute dtype)
    w_ref:   (tk, cout_p)   pre-masked, pre-reshaped weight tile (RHS)
    b_ref:   (1, cout_p)    pre-masked bias (f32)
    o_ref:   (tm, cout_p)   output tile (out dtype)
    acc_ref: (tm, cout_p)   f32 accumulator scratch, resident across K steps
    """
    k = pl.program_id(2)

    @pl.when(k == 0)
    def _init():
        acc_ref[...] = jnp.zeros_like(acc_ref)

    # Single MXU contraction per step; K already folds KH*KW*Cin_g.
    acc_ref[...] += jax.lax.dot_general(
        p_ref[...], w_ref[...],
        dimension_numbers=(((1,), (0,)), ((), ())),
        preferred_element_type=jnp.float32)

    @pl.when(k == pl.num_programs(2) - 1)
    def _finalize():
        o_ref[...] = (acc_ref[...] + b_ref[...]).astype(o_ref.dtype)


def _choose_tm(m, groups, block_m):
    if block_m is not None:
        return max(8, _round_up(block_m, 8))
    tm = min(512, _round_up(m, 8))
    # Guarantee >= 2 parallel grid steps where possible so both v7x
    # TensorCores get work (harmless on single-TC v5e/v6e).
    if groups == 1 and m > 8 and _cdiv(m, tm) < 2:
        tm = max(8, _round_up(_cdiv(m, 2), 8))
    return tm


@functools.partial(jax.jit, static_argnames=(
    "stride", "padding", "dilation", "groups", "compute_dtype", "out_dtype",
    "block_m"))
def masked_conv2d(x, weight, weight_mask, bias, bias_mask, *,
                  stride=1, padding=0, dilation=1, groups=1,
                  compute_dtype=jnp.bfloat16, out_dtype=None, block_m=None):
    """MaskConv2Module.forward: conv2d(x, W*W_mask, b*b_mask, ...).

    compute_dtype: MXU operand dtype (bf16 default; pass jnp.float32 for the
                   full-precision path). Accumulation is always f32.
    out_dtype:     output dtype (defaults to x.dtype).
    """
    n, cin, h, w = x.shape
    cout, cin_g, kh, kw = weight.shape
    assert cin == cin_g * groups and cout % groups == 0
    cout_g = cout // groups
    out_dtype = x.dtype if out_dtype is None else out_dtype

    oh = (h + 2 * padding - dilation * (kh - 1) - 1) // stride + 1
    ow = (w + 2 * padding - dilation * (kw - 1) - 1) // stride + 1
    m = n * oh * ow
    k_dim = kh * kw * cin_g

    # ---- mask application hoisted out of the kernel (done once) ----
    w_masked = weight * weight_mask.astype(weight.dtype)
    b_masked = bias * bias_mask.astype(bias.dtype)

    # ---- tiling ----
    tm = _choose_tm(m, groups, block_m)
    mp = _round_up(m, tm)
    if k_dim <= 2048:
        tk = _round_up(k_dim, 128)   # single K step, lane-dense contraction
    else:
        tk = 1024                    # stream the weight through VMEM
    kp = _round_up(k_dim, tk)
    cout_p = _round_up(cout_g, 128)  # lane-dense (unmasked) output stores

    # ---- wrapper-side im2col: fold KH*KW taps + Cin into the lane dim ----
    # Stride / dilation are decomposed here with unit-stride XLA slices so the
    # kernel never issues strided sublane reads.
    x_nhwc = jnp.transpose(x, (0, 2, 3, 1))
    x_sp = jnp.pad(x_nhwc, ((0, 0), (padding, padding), (padding, padding),
                            (0, 0)))
    taps = []
    for ih in range(kh):
        for iw in range(kw):
            h0, w0 = ih * dilation, iw * dilation
            h1 = h0 + (oh - 1) * stride + 1
            w1 = w0 + (ow - 1) * stride + 1
            taps.append(x_sp[:, h0:h1:stride, w0:w1:stride, :])
    pat = jnp.stack(taps, axis=3)                        # (N, OH, OW, T, Cin)
    pat = pat.reshape(n, oh, ow, kh * kw, groups, cin_g)
    pat = jnp.transpose(pat, (4, 0, 1, 2, 3, 5))         # (G,N,OH,OW,T,Cin_g)
    pat = pat.reshape(groups, m, k_dim)
    pat = jnp.pad(pat, ((0, 0), (0, mp - m), (0, kp - k_dim)))
    pat = pat.astype(compute_dtype)

    # (Cout, Cin_g, KH, KW) -> (G, KH*KW*Cin_g, Cout_g): MXU-ready RHS whose
    # row ordering matches the patch lane ordering.
    w_r = w_masked.reshape(groups, cout_g, cin_g, kh, kw)
    w_r = jnp.transpose(w_r, (0, 3, 4, 2, 1))            # (G,KH,KW,Cin_g,Cout_g)
    w_r = w_r.reshape(groups, k_dim, cout_g)
    w_r = jnp.pad(w_r, ((0, 0), (0, kp - k_dim), (0, cout_p - cout_g)))
    w_r = w_r.astype(compute_dtype)

    b_r = b_masked.reshape(groups, 1, cout_g).astype(jnp.float32)
    b_r = jnp.pad(b_r, ((0, 0), (0, 0), (0, cout_p - cout_g)))

    grid = (groups, mp // tm, kp // tk)

    cdt = jnp.dtype(compute_dtype).itemsize
    odt = jnp.dtype(out_dtype).itemsize
    vmem_est = (2 * tm * tk * cdt + 2 * tk * cout_p * cdt
                + 2 * tm * cout_p * odt + tm * cout_p * 4 + 2 * cout_p * 4)
    vmem_limit = int(min(96 * 2 ** 20, max(32 * 2 ** 20, 2 * vmem_est)))

    out = pl.pallas_call(
        _masked_conv_matmul_kernel,
        out_shape=jax.ShapeDtypeStruct((groups, mp, cout_p), out_dtype),
        grid_spec=pltpu.PrefetchScalarGridSpec(
            num_scalar_prefetch=0,
            grid=grid,
            in_specs=[
                # im2col patches: changes with (g, m-tile, k-tile)
                pl.BlockSpec((None, tm, tk), lambda g, i, k: (g, i, k)),
                # weight tile: streams along the K axis, reused across m-tiles
                pl.BlockSpec((None, tk, cout_p), lambda g, i, k: (g, k, 0)),
                # pre-masked bias, constant index within a group
                # TODO(synk): pipeline_mode=pl.Buffered(1) here (and on the
                # weight when kp==tk) would drop one VMEM buffer each on v7x.
                pl.BlockSpec((None, 1, cout_p), lambda g, i, k: (g, 0, 0)),
            ],
            out_specs=pl.BlockSpec((None, tm, cout_p),
                                   lambda g, i, k: (g, i, 0)),
            scratch_shapes=[pltpu.VMEM((tm, cout_p), jnp.float32)],
        ),
        compiler_params=pltpu.CompilerParams(
            dimension_semantics=("parallel", "parallel", "arbitrary"),
            vmem_limit_bytes=vmem_limit,
        ),
    )(pat, w_r, b_r)

    # (G, Mp, Cout_p) -> NCHW, dropping M / channel padding.
    out = out[:, :m, :cout_g].reshape(groups, n, oh, ow, cout_g)
    out = jnp.transpose(out, (1, 0, 4, 2, 3)).reshape(n, cout, oh, ow)
    return out


def masked_conv2d_forward(x, weight, weight_mask=None, bias=None,
                          bias_mask=None, **kwargs):
    """Convenience wrapper handling bias=None / missing masks."""
    cout = weight.shape[0]
    if weight_mask is None:
        weight_mask = jnp.ones(weight.shape, jnp.uint8)
    if bias is None:
        bias = jnp.zeros((cout,), weight.dtype)
        bias_mask = jnp.ones((cout,), jnp.uint8)
    elif bias_mask is None:
        bias_mask = jnp.ones((cout,), jnp.uint8)
    return masked_conv2d(x, weight, weight_mask, bias, bias_mask, **kwargs)


if __name__ == "__main__":
    def conv_ref(x, weight, weight_mask, bias, bias_mask, *, stride, padding,
                 dilation, groups, op_dtype):
        wm = (weight * weight_mask.astype(jnp.float32)).astype(op_dtype)
        y = jax.lax.conv_general_dilated(
            x.astype(op_dtype), wm,
            window_strides=(stride, stride),
            padding=((padding, padding), (padding, padding)),
            rhs_dilation=(dilation, dilation),
            feature_group_count=groups,
            dimension_numbers=("NCHW", "OIHW", "NCHW"),
            preferred_element_type=jnp.float32,
            precision=jax.lax.Precision.HIGHEST)
        bm = bias * bias_mask.astype(jnp.float32)
        return y + bm[None, :, None, None]

    def make_inputs(key, batch, cin, cout, hw, ksize, groups):
        kx, kwt, kb, km, kbm = jax.random.split(key, 5)
        x = jax.random.normal(kx, (batch, cin, hw, hw), jnp.float32)
        # Matches reset_parameters(): kaiming_uniform(a=sqrt(5)).
        fan_in = (cin // groups) * ksize * ksize
        bound = 1.0 / math.sqrt(fan_in)
        weight = jax.random.uniform(kwt, (cout, cin // groups, ksize, ksize),
                                    jnp.float32, -bound, bound)
        bias = jax.random.uniform(kb, (cout,), jnp.float32, -bound, bound)
        weight_mask = (jax.random.uniform(km, weight.shape) > 0.3).astype(jnp.uint8)
        bias_mask = (jax.random.uniform(kbm, bias.shape) > 0.25).astype(jnp.uint8)
        return x, weight, weight_mask, bias, bias_mask

    # ------- main config: batch=2, cin=4, cout=8, 16x16 input, 3x3, pad=1 ---
    cfg = dict(stride=1, padding=1, dilation=1, groups=1)
    x, weight, weight_mask, bias, bias_mask = make_inputs(
        jax.random.PRNGKey(0), 2, 4, 8, 16, 3, 1)

    # Default path: bf16 operands, f32 accumulation (vs bf16-operand ref).
    out_bf16 = jax.block_until_ready(
        masked_conv2d(x, weight, weight_mask, bias, bias_mask, **cfg))
    ref_bf16 = conv_ref(x, weight, weight_mask, bias, bias_mask,
                        op_dtype=jnp.bfloat16, **cfg)
    assert out_bf16.shape == ref_bf16.shape
    assert jnp.allclose(out_bf16, ref_bf16, atol=2e-2, rtol=2e-2), \
        "bf16 path mismatch vs reference"

    # Full-precision operand path vs exact reference.
    out_f32 = jax.block_until_ready(
        masked_conv2d(x, weight, weight_mask, bias, bias_mask,
                      compute_dtype=jnp.float32, **cfg))
    ref_f32 = conv_ref(x, weight, weight_mask, bias, bias_mask,
                       op_dtype=jnp.float32, **cfg)
    assert jnp.allclose(out_f32, ref_f32, atol=1e-3, rtol=1e-3), \
        "f32 path mismatch vs reference"

    # stride=2 path (stride decomposed in the wrapper).
    cfg2 = dict(stride=2, padding=1, dilation=1, groups=1)
    out2 = jax.block_until_ready(
        masked_conv2d(x, weight, weight_mask, bias, bias_mask,
                      compute_dtype=jnp.float32, **cfg2))
    ref2 = conv_ref(x, weight, weight_mask, bias, bias_mask,
                    op_dtype=jnp.float32, **cfg2)
    assert jnp.allclose(out2, ref2, atol=1e-3, rtol=1e-3), \
        "stride=2 path mismatch vs reference"

    # groups=2 + dilation=2 path (groups folded into the grid).
    cfg3 = dict(stride=1, padding=2, dilation=2, groups=2)
    xg, wg, wmg, bg, bmg = make_inputs(jax.random.PRNGKey(1), 2, 4, 8, 16, 3, 2)
    out3 = jax.block_until_ready(
        masked_conv2d(xg, wg, wmg, bg, bmg, compute_dtype=jnp.float32, **cfg3))
    ref3 = conv_ref(xg, wg, wmg, bg, bmg, op_dtype=jnp.float32, **cfg3)
    assert jnp.allclose(out3, ref3, atol=1e-3, rtol=1e-3), \
        "groups=2/dilation=2 path mismatch vs reference"

    # bias=None convenience path.
    out4 = jax.block_until_ready(
        masked_conv2d_forward(x, weight, weight_mask,
                              compute_dtype=jnp.float32, **cfg))
    ref4 = conv_ref(x, weight, weight_mask, jnp.zeros((8,), jnp.float32),
                    jnp.ones((8,), jnp.uint8), op_dtype=jnp.float32, **cfg)
    assert jnp.allclose(out4, ref4, atol=1e-3, rtol=1e-3), \
        "bias=None path mismatch vs reference"

    print("KERNEL_OK")
</pallas_src>

<mosaic_0001>
module attributes {stable_mosaic.version = 11 : i64} {
  func.func @_masked_conv_matmul_kernel(%arg0: i32, %arg1: i32, %arg2: i32, %arg3: memref<1x256x128xbf16, #tpu.memory_space<vmem>>, %arg4: memref<1x128x128xbf16, #tpu.memory_space<vmem>>, %arg5: memref<1x1x128xf32, #tpu.memory_space<vmem>>, %arg6: memref<1x256x128xf32, #tpu.memory_space<vmem>>, %arg7: memref<256x128xf32, #tpu.memory_space<vmem>>) attributes {dimension_semantics = [#tpu.dimension_semantics<parallel>, #tpu.dimension_semantics<parallel>, #tpu.dimension_semantics<arbitrary>], iteration_bounds = array<i64: 1, 2, 1>, scalar_prefetch = 0 : i64, scratch_operands = 1 : i64, tpu.core_type = #tpu.core_type<tc>, window_params = [{transform_indices = @transform_0, window_bounds = array<i64: 1, 256, 128>}, {transform_indices = @transform_1, window_bounds = array<i64: 1, 128, 128>}, {transform_indices = @transform_2, window_bounds = array<i64: 1, 1, 128>}, {transform_indices = @transform_3, window_bounds = array<i64: 1, 256, 128>}]} {
    %c0_i32 = arith.constant 0 : i32
    %0 = arith.cmpi eq, %arg2, %c0_i32 : i32
    %1 = arith.extui %0 : i1 to i32
    %c0_i32_0 = arith.constant 0 : i32
    %2 = arith.cmpi ne, %1, %c0_i32_0 : i32
    scf.if %2 {
      %cst_12 = arith.constant 0.000000e+00 : f32
      %14 = vector.broadcast %cst_12 : f32 to vector<256x128xf32>
      %c0_13 = arith.constant 0 : index
      %c0_14 = arith.constant 0 : index
      %15 = vector.load %arg7[%c0_13, %c0_14] : memref<256x128xf32, #tpu.memory_space<vmem>>, vector<256x128xf32>
      tpu.vector_store %arg7[%c0_13, %c0_14], %14 {strides = array<i32>} : memref<256x128xf32, #tpu.memory_space<vmem>>, vector<256x128xf32>,
    } else {
    }
    %c0 = arith.constant 0 : index
    %c0_1 = arith.constant 0 : index
    %3 = vector.load %arg7[%c0, %c0_1] : memref<256x128xf32, #tpu.memory_space<vmem>>, vector<256x128xf32>
    %c0_2 = arith.constant 0 : index
    %c0_3 = arith.constant 0 : index
    %c0_4 = arith.constant 0 : index
    %4 = vector.load %arg3[%c0_2, %c0_3, %c0_4] : memref<1x256x128xbf16, #tpu.memory_space<vmem>>, vector<1x256x128xbf16>
    %5 = vector.shape_cast %4 : vector<1x256x128xbf16> to vector<256x128xbf16>
    %c0_5 = arith.constant 0 : index
    %c0_6 = arith.constant 0 : index
    %c0_7 = arith.constant 0 : index
    %6 = vector.load %arg4[%c0_5, %c0_6, %c0_7] : memref<1x128x128xbf16, #tpu.memory_space<vmem>>, vector<1x128x128xbf16>
    %7 = vector.shape_cast %6 : vector<1x128x128xbf16> to vector<128x128xbf16>
    %cst = arith.constant dense<0.000000e+00> : vector<256x128xf32>
    %8 = tpu.matmul %5, %7, %cst {dimension_numbers = #tpu.dot_dimension_numbers<[1], [0], [0], [1], [0, 0, 1, 1], [], []>} : vector<256x128xbf16>, vector<128x128xbf16>, vector<256x128xf32> -> vector<256x128xf32>
    %9 = arith.addf %3, %8 : vector<256x128xf32>
    %c0_8 = arith.constant 0 : index
    %c0_9 = arith.constant 0 : index
    %10 = vector.load %arg7[%c0_8, %c0_9] : memref<256x128xf32, #tpu.memory_space<vmem>>, vector<256x128xf32>
    tpu.vector_store %arg7[%c0_8, %c0_9], %9 {strides = array<i32>} : memref<256x128xf32, #tpu.memory_space<vmem>>, vector<256x128xf32>,
    %c0_i32_10 = arith.constant 0 : i32
    %11 = arith.cmpi eq, %arg2, %c0_i32_10 : i32
    %12 = arith.extui %11 : i1 to i32
    %c0_i32_11 = arith.constant 0 : i32
    %13 = arith.cmpi ne, %12, %c0_i32_11 : i32
    scf.if %13 {
      %c0_12 = arith.constant 0 : index
      %c0_13 = arith.constant 0 : index
      %14 = vector.load %arg7[%c0_12, %c0_13] : memref<256x128xf32, #tpu.memory_space<vmem>>, vector<256x128xf32>
      %c0_14 = arith.constant 0 : index
      %c0_15 = arith.constant 0 : index
      %c0_16 = arith.constant 0 : index
      %15 = vector.load %arg5[%c0_14, %c0_15, %c0_16] : memref<1x1x128xf32, #tpu.memory_space<vmem>>, vector<1x1x128xf32>
      %16 = vector.shape_cast %15 : vector<1x1x128xf32> to vector<1x128xf32>
      %17 = vector.broadcast %16 : vector<1x128xf32> to vector<256x128xf32>
      %18 = arith.addf %14, %17 : vector<256x128xf32>
      %c0_17 = arith.constant 0 : index
      %c0_18 = arith.constant 0 : index
      %c0_19 = arith.constant 0 : index
      %19 = vector.load %arg6[%c0_17, %c0_18, %c0_19] : memref<1x256x128xf32, #tpu.memory_space<vmem>>, vector<1x256x128xf32>
      %20 = vector.shape_cast %19 : vector<1x256x128xf32> to vector<256x128xf32>
      %21 = vector.shape_cast %18 : vector<256x128xf32> to vector<1x256x128xf32>
      tpu.vector_store %arg6[%c0_17, %c0_18, %c0_19], %21 {strides = array<i32>} : memref<1x256x128xf32, #tpu.memory_space<vmem>>, vector<1x256x128xf32>,
    } else {
    }
    return
  }
  func.func @transform_0(%arg0: i32, %arg1: i32, %arg2: i32) -> (i32, i32, i32) {
    %c0_i32 = arith.constant 0 : i32
    return %arg0, %arg1, %arg2 : i32, i32, i32
  }
  func.func @transform_1(%arg0: i32, %arg1: i32, %arg2: i32) -> (i32, i32, i32) {
    %c0_i32 = arith.constant 0 : i32
    %c0_i32_0 = arith.constant 0 : i32
    return %arg0, %arg2, %c0_i32 : i32, i32, i32
  }
  func.func @transform_2(%arg0: i32, %arg1: i32, %arg2: i32) -> (i32, i32, i32) {
    %c0_i32 = arith.constant 0 : i32
    %c0_i32_0 = arith.constant 0 : i32
    %c0_i32_1 = arith.constant 0 : i32
    return %arg0, %c0_i32, %c0_i32_0 : i32, i32, i32
  }
  func.func @transform_3(%arg0: i32, %arg1: i32, %arg2: i32) -> (i32, i32, i32) {
    %c0_i32 = arith.constant 0 : i32
    %c0_i32_0 = arith.constant 0 : i32
    return %arg0, %arg1, %c0_i32 : i32, i32, i32
  }
}

</mosaic_0001>

<bundles_post_ra>
// kernel: masked_conv2d.1
= control target key start
LH: loop header
LB: loop body
LE: loop exit
PB: predicated region body
PF: predicated region fallthrough
CT: control target
= control target key end

     0   :  { %s1146_s12 = smov 0   ;;  %s1148_s13 = smov 0   ;;  %s1299_s0 = inlined_call_operand.vmem [shape: bf16[1,512,128], index: 0, kind: input, shape index: {}]   ;;  %s1300_s1 = inlined_call_operand.vmem [shape: bf16[1,128,128], index: 1, kind: input, shape index: {}]   ;;  %s1301_s2 = inlined_call_operand.vmem [shape: f32[1,1,128], index: 2, kind: input, shape index: {}]   ;;  %s1302_s3 = inlined_call_operand.vmem [shape: f32[1,512,128], index: 3, kind: output, shape index: {}]  }
   0x1   :  { %s1150_s14 = smov 0  }
   0x2 LB: > { %s28_s15 = sadd.s32 1, %s1120_s13  ;;  %p926_p0 = scmp.ge.s32.totalorder %s1124_s14, 1  ;;  %s1124_s14 = sphi %s1150_s14, %s13_s14   ;;  %s1120_s13 = sphi %s1148_s13, %s1304_s13   ;;  %s1116_s12 = sphi %s1146_s12, %s1303_s12  }
   0x3   : > { %p30_p1 = scmp.ge.s32.totalorder %s28_s15, 2  ;;  %p195_p2 = scmp.lt.s32.totalorder %s1124_s14, 3 }
   0x5   : > { %s1306_s15 = smov (%p30_p1, %s28_s15), 0  ;;  %p196_p3 = pnand %p926_p0, %p195_p2 }
   0x6   : > { %s927_s24 = sshll.u32 (!%p196_p3), %s1116_s12, 5 }
   0x7   : > { %199 = sbr.rel (%p196_p3) target bundleno = 237 (0xed), region = 32  ;;  %p245_p4 = scmp.lt.s32.totalorder (!%p196_p3), %s927_s24, 63 }
   0xc   : > { %v1052_v0 = vld [vmem:[%s1300_s1 + $0x38] sm:$0xff]  ;;  %v1051_v1 = vld [vmem:[%s1300_s1 + $0x30] sm:$0xff]  ;;  %v1050_v2 = vld [vmem:[%s1300_s1 + $0x28] sm:$0xff]  ;;  %s1308_s24 = smov (!%p245_p4, %s927_s24), 63 }
   0xd   : > { %538 = vmatpush.bf16.msra.mxu0 %v1052_v0  ;;  %1053 = vmatpush.bf16.msra.mxu1 %v1052_v0  ;;  %v1049_v3 = vld [vmem:[%s1300_s1 + $0x20] sm:$0xff]  ;;  %v1048_v4 = vld [vmem:[%s1300_s1 + $0x18] sm:$0xff]  ;;  %v1047_v5 = vld [vmem:[%s1300_s1 + $0x10] sm:$0xff]  ;;  %s928_s4 = sshll.u32 %s1308_s24, 2  ;;  %s930_s10 = sshll.u32 %s1308_s24, 3 }
   0xe   : > { %1054 = vmatpush.bf16.msra.mxu2 %v1052_v0  ;;  %1055 = vmatpush.bf16.msra.mxu3 %v1052_v0  ;;  %v1046_v6 = vld [vmem:[%s1300_s1 + $0x8] sm:$0xff]  ;;  %v1045_v7 = vld [vmem:[%s1300_s1] sm:$0xff]  ;;  %s1197_s9 = scalar_lea.vmem %s1299_s0, %s928_s4  ;;  %s1224_s18 = scalar_lea.vmem %s1302_s3, %s930_s10 }
   0xf   : > { %v1029_v8 = vld [vmem:[%s1197_s9] sm:$0xff]  ;;  %v1030_v12 = vld [vmem:[%s1197_s9 + $0x8] sm:$0xff]  ;;  %v1031_v16 = vld [vmem:[%s1197_s9 + $0x10] sm:$0xff] }
  0x10   : > { %v1033_v9 = vld [vmem:[%s1197_s9 + $0x20] sm:$0xff]  ;;  %v1034_v13 = vld [vmem:[%s1197_s9 + $0x28] sm:$0xff]  ;;  %v1035_v17 = vld [vmem:[%s1197_s9 + $0x30] sm:$0xff] }
  0x11   : > { %539 = vmatpush.bf16.msra.mxu0 %v1051_v1  ;;  %1056 = vmatpush.bf16.msra.mxu1 %v1051_v1  ;;  %v1037_v10 = vld [vmem:[%s1197_s9 + $0x40] sm:$0xff]  ;;  %v1038_v14 = vld [vmem:[%s1197_s9 + $0x48] sm:$0xff]  ;;  %v1039_v18 = vld [vmem:[%s1197_s9 + $0x50] sm:$0xff] }
  0x12   : > { %1057 = vmatpush.bf16.msra.mxu2 %v1051_v1  ;;  %1058 = vmatpush.bf16.msra.mxu3 %v1051_v1  ;;  %v1041_v11 = vld [vmem:[%s1197_s9 + $0x60] sm:$0xff]  ;;  %v1042_v15 = vld [vmem:[%s1197_s9 + $0x68] sm:$0xff]  ;;  %v1043_v19 = vld [vmem:[%s1197_s9 + $0x70] sm:$0xff] }
  0x13   : > { %v1032_v20 = vld [vmem:[%s1197_s9 + $0x18] sm:$0xff]  ;;  %v1219_v24 = vld [vmem:[%s1301_s2] ss:$0 sm:$0xff] }
  0x14   : > { %v1036_v21 = vld [vmem:[%s1197_s9 + $0x38] sm:$0xff] }
  0x15   : > { %540 = vmatpush.bf16.msra.mxu0 %v1050_v2  ;;  %1059 = vmatpush.bf16.msra.mxu1 %v1050_v2  ;;  %v1040_v22 = vld [vmem:[%s1197_s9 + $0x58] sm:$0xff] }
  0x16   : > { %1060 = vmatpush.bf16.msra.mxu2 %v1050_v2  ;;  %1061 = vmatpush.bf16.msra.mxu3 %v1050_v2  ;;  %v1044_v23 = vld [vmem:[%s1197_s9 + $0x78] sm:$0xff] }
  0x19   : > { %541 = vmatpush.bf16.msra.mxu0 %v1049_v3  ;;  %1062 = vmatpush.bf16.msra.mxu1 %v1049_v3 }
  0x1a   : > { %1063 = vmatpush.bf16.msra.mxu2 %v1049_v3  ;;  %1064 = vmatpush.bf16.msra.mxu3 %v1049_v3 }
  0x1d   : > { %542 = vmatpush.bf16.msra.mxu0 %v1048_v4  ;;  %1065 = vmatpush.bf16.msra.mxu1 %v1048_v4 }
  0x1e   : > { %1066 = vmatpush.bf16.msra.mxu2 %v1048_v4  ;;  %1067 = vmatpush.bf16.msra.mxu3 %v1048_v4 }
  0x21   : > { %543 = vmatpush.bf16.msra.mxu0 %v1047_v5  ;;  %1068 = vmatpush.bf16.msra.mxu1 %v1047_v5 }
  0x22   : > { %1069 = vmatpush.bf16.msra.mxu2 %v1047_v5  ;;  %1070 = vmatpush.bf16.msra.mxu3 %v1047_v5 }
  0x25   : > { %544 = vmatpush.bf16.msra.mxu0 %v1046_v6  ;;  %1071 = vmatpush.bf16.msra.mxu1 %v1046_v6 }
  0x26   : > { %1072 = vmatpush.bf16.msra.mxu2 %v1046_v6  ;;  %1073 = vmatpush.bf16.msra.mxu3 %v1046_v6 }
  0x29   : > { %545 = vmatpush.bf16.msra.mxu0 %v1045_v7  ;;  %1074 = vmatpush.bf16.msra.mxu1 %v1045_v7 }
  0x2a   : > { %1075 = vmatpush.bf16.msra.mxu2 %v1045_v7  ;;  %1076 = vmatpush.bf16.msra.mxu3 %v1045_v7 }
  0x2c   : > { %546 = vmatmul.bf16.vlgmr.msra.gmra.mxu0 %v1029_v8  ;;  %566 = vmatmul.bf16.vlgmr.msra.gmra.mxu1 %v1033_v9 }
  0x2d   : > { %586 = vmatmul.bf16.vlgmr.msra.gmra.mxu2 %v1037_v10  ;;  %606 = vmatmul.bf16.vlgmr.msra.gmra.mxu3 %v1041_v11 }
  0x3c   : > { %551 = vmatmul.bf16.gmra.mxu0 %v1030_v12  ;;  %571 = vmatmul.bf16.gmra.mxu1 %v1034_v13 }
  0x3d   : > { %591 = vmatmul.bf16.gmra.mxu2 %v1038_v14  ;;  %611 = vmatmul.bf16.gmra.mxu3 %v1042_v15 }
  0x4c   : > { %556 = vmatmul.bf16.gmra.mxu0 %v1031_v16  ;;  %576 = vmatmul.bf16.gmra.mxu1 %v1035_v17 }
  0x4d   : > { %596 = vmatmul.bf16.gmra.mxu2 %v1039_v18  ;;  %616 = vmatmul.bf16.gmra.mxu3 %v1043_v19 }
  0x5c   : > { %561 = vmatmul.bf16.gmra.mxu0 %v1032_v20  ;;  %581 = vmatmul.bf16.gmra.mxu1 %v1036_v21 }
  0x5d   : > { %601 = vmatmul.bf16.gmra.mxu2 %v1040_v22  ;;  %621 = vmatmul.bf16.gmra.mxu3 %v1044_v23 }
  0xa9   : > { %v547_v25 = vpop.f32.mrf.mxu0  ;;  %v567_v26 = vpop.f32.mrf.mxu1 }
  0xaa   : > { %v730_v27 = vadd.f32 %v1219_v24, %v547_v25  ;;  %v738_v28 = vadd.f32 %v1219_v24, %v567_v26 }
  0xac   : > { %762 = vst [vmem:[%s1224_s18] sm:$0xff] %v730_v27 }
  0xad   : > { %770 = vst [vmem:[%s1224_s18 + $0x40] sm:$0xff] %v738_v28 }
  0xb0   : > { %v587_v29 = vpop.f32.mrf.mxu2  ;;  %v607_v30 = vpop.f32.mrf.mxu3 }
  0xb1   : > { %v746_v31 = vadd.f32 %v1219_v24, %v587_v29  ;;  %v754_v32 = vadd.f32 %v1219_v24, %v607_v30  ;;  %v549_v33 = vpop.f32.mrf.mxu0  ;;  %v569_v34 = vpop.f32.mrf.mxu1 }
  0xb2   : > { %v731_v35 = vadd.f32 %v1219_v24, %v549_v33  ;;  %v739_v36 = vadd.f32 %v1219_v24, %v569_v34 }
  0xb3   : > { %778 = vst [vmem:[%s1224_s18 + $0x80] sm:$0xff] %v746_v31 }
  0xb4   : > { %786 = vst [vmem:[%s1224_s18 + $0xc0] sm:$0xff] %v754_v32 }
  0xb5   : > { %763 = vst [vmem:[%s1224_s18 + $0x8] sm:$0xff] %v731_v35 }
  0xb6   : > { %771 = vst [vmem:[%s1224_s18 + $0x48] sm:$0xff] %v739_v36 }
  0xb8   : > { %v589_v37 = vpop.f32.mrf.mxu2  ;;  %v609_v38 = vpop.f32.mrf.mxu3 }
  0xb9   : > { %v747_v39 = vadd.f32 %v1219_v24, %v589_v37  ;;  %v755_v40 = vadd.f32 %v1219_v24, %v609_v38  ;;  %v552_v41 = vpop.f32.mrf.mxu0  ;;  %v572_v42 = vpop.f32.mrf.mxu1 }
  0xba   : > { %v732_v43 = vadd.f32 %v1219_v24, %v552_v41  ;;  %v740_v44 = vadd.f32 %v1219_v24, %v572_v42 }
  0xbb   : > { %779 = vst [vmem:[%s1224_s18 + $0x88] sm:$0xff] %v747_v39 }
  0xbc   : > { %787 = vst [vmem:[%s1224_s18 + $0xc8] sm:$0xff] %v755_v40 }
  0xbd   : > { %764 = vst [vmem:[%s1224_s18 + $0x10] sm:$0xff] %v732_v43 }
  0xbe   : > { %772 = vst [vmem:[%s1224_s18 + $0x50] sm:$0xff] %v740_v44 }
  0xc0   : > { %v592_v45 = vpop.f32.mrf.mxu2  ;;  %v612_v46 = vpop.f32.mrf.mxu3 }
  0xc1   : > { %v748_v47 = vadd.f32 %v1219_v24, %v592_v45  ;;  %v756_v48 = vadd.f32 %v1219_v24, %v612_v46  ;;  %v554_v49 = vpop.f32.mrf.mxu0  ;;  %v574_v50 = vpop.f32.mrf.mxu1 }
  0xc2   : > { %v733_v51 = vadd.f32 %v1219_v24, %v554_v49  ;;  %v741_v52 = vadd.f32 %v1219_v24, %v574_v50 }
  0xc3   : > { %780 = vst [vmem:[%s1224_s18 + $0x90] sm:$0xff] %v748_v47 }
  0xc4   : > { %788 = vst [vmem:[%s1224_s18 + $0xd0] sm:$0xff] %v756_v48 }
  0xc5   : > { %765 = vst [vmem:[%s1224_s18 + $0x18] sm:$0xff] %v733_v51 }
  0xc6   : > { %773 = vst [vmem:[%s1224_s18 + $0x58] sm:$0xff] %v741_v52 }
  0xc8   : > { %v594_v53 = vpop.f32.mrf.mxu2  ;;  %v614_v54 = vpop.f32.mrf.mxu3 }
  0xc9   : > { %v749_v55 = vadd.f32 %v1219_v24, %v594_v53  ;;  %v757_v56 = vadd.f32 %v1219_v24, %v614_v54  ;;  %v557_v57 = vpop.f32.mrf.mxu0  ;;  %v577_v58 = vpop.f32.mrf.mxu1 }
  0xca   : > { %v734_v59 = vadd.f32 %v1219_v24, %v557_v57  ;;  %v742_v60 = vadd.f32 %v1219_v24, %v577_v58 }
  0xcb   : > { %781 = vst [vmem:[%s1224_s18 + $0x98] sm:$0xff] %v749_v55 }
  0xcc   : > { %789 = vst [vmem:[%s1224_s18 + $0xd8] sm:$0xff] %v757_v56 }
  0xcd   : > { %766 = vst [vmem:[%s1224_s18 + $0x20] sm:$0xff] %v734_v59 }
  0xce   : > { %774 = vst [vmem:[%s1224_s18 + $0x60] sm:$0xff] %v742_v60 }
  0xd0   : > { %v597_v61 = vpop.f32.mrf.mxu2  ;;  %v617_v62 = vpop.f32.mrf.mxu3 }
  0xd1   : > { %v750_v63 = vadd.f32 %v1219_v24, %v597_v61  ;;  %v758_v0 = vadd.f32 %v1219_v24, %v617_v62  ;;  %v559_v1 = vpop.f32.mrf.mxu0  ;;  %v579_v2 = vpop.f32.mrf.mxu1 }
  0xd2   : > { %v735_v3 = vadd.f32 %v1219_v24, %v559_v1  ;;  %v743_v4 = vadd.f32 %v1219_v24, %v579_v2 }
  0xd3   : > { %782 = vst [vmem:[%s1224_s18 + $0xa0] sm:$0xff] %v750_v63 }
  0xd4   : > { %790 = vst [vmem:[%s1224_s18 + $0xe0] sm:$0xff] %v758_v0 }
  0xd5   : > { %767 = vst [vmem:[%s1224_s18 + $0x28] sm:$0xff] %v735_v3 }
  0xd6   : > { %775 = vst [vmem:[%s1224_s18 + $0x68] sm:$0xff] %v743_v4 }
  0xd8   : > { %v599_v5 = vpop.f32.mrf.mxu2  ;;  %v619_v6 = vpop.f32.mrf.mxu3 }
  0xd9   : > { %v751_v7 = vadd.f32 %v1219_v24, %v599_v5  ;;  %v759_v8 = vadd.f32 %v1219_v24, %v619_v6  ;;  %v562_v9 = vpop.f32.mrf.mxu0  ;;  %v582_v10 = vpop.f32.mrf.mxu1 }
  0xda   : > { %v736_v11 = vadd.f32 %v1219_v24, %v562_v9  ;;  %v744_v12 = vadd.f32 %v1219_v24, %v582_v10 }
  0xdb   : > { %783 = vst [vmem:[%s1224_s18 + $0xa8] sm:$0xff] %v751_v7 }
  0xdc   : > { %791 = vst [vmem:[%s1224_s18 + $0xe8] sm:$0xff] %v759_v8 }
  0xdd   : > { %768 = vst [vmem:[%s1224_s18 + $0x30] sm:$0xff] %v736_v11 }
  0xde   : > { %776 = vst [vmem:[%s1224_s18 + $0x70] sm:$0xff] %v744_v12 }
  0xe0   : > { %v602_v13 = vpop.f32.mrf.mxu2  ;;  %v622_v14 = vpop.f32.mrf.mxu3 }
  0xe1   : > { %v752_v15 = vadd.f32 %v1219_v24, %v602_v13  ;;  %v760_v16 = vadd.f32 %v1219_v24, %v622_v14  ;;  %v564_v17 = vpop.f32.mrf.mxu0  ;;  %v584_v18 = vpop.f32.mrf.mxu1 }
  0xe2   : > { %v737_v19 = vadd.f32 %v1219_v24, %v564_v17  ;;  %v745_v20 = vadd.f32 %v1219_v24, %v584_v18 }
  0xe3   : > { %784 = vst [vmem:[%s1224_s18 + $0xb0] sm:$0xff] %v752_v15 }
  0xe4   : > { %792 = vst [vmem:[%s1224_s18 + $0xf0] sm:$0xff] %v760_v16 }
  0xe5   : > { %769 = vst [vmem:[%s1224_s18 + $0x38] sm:$0xff] %v737_v19 }
  0xe6   : > { %777 = vst [vmem:[%s1224_s18 + $0x78] sm:$0xff] %v745_v20 }
  0xe8   : > { %v604_v21 = vpop.f32.mrf.mxu2  ;;  %v624_v22 = vpop.f32.mrf.mxu3 }
  0xe9   : > { %v753_v23 = vadd.f32 %v1219_v24, %v604_v21  ;;  %v761_v25 = vadd.f32 %v1219_v24, %v624_v22 }
  0xeb   : > { %785 = vst [vmem:[%s1224_s18 + $0xb8] sm:$0xff] %v753_v23 }
  0xec   : > { %793 = vst [vmem:[%s1224_s18 + $0xf8] sm:$0xff] %v761_v25 }
  0xed PF: > { %s13_s14 = sadd.s32 1, %s1124_s14   ;;  %s1303_s12 = smov %s1120_s13 }
  0xee   : > { %p10_p5 = scmp.ge.s32.totalorder %s13_s14, 4   ;;  %s1304_s13 = smov %s1306_s15 }
  0xf0   :  { %12 = sbr.rel (!%p10_p5) target bundleno = 2 (0x2), region = 76 }

</bundles_post_ra>
